<compile_context>
chip_gen: v6e
topology: v6e:2x2x1
jax: 0.10.0
libtpu: 0.0.40
codegen_flags: <defaults>
</compile_context>

<pallas_src>
import functools

import jax
import jax.numpy as jnp
from jax.experimental import pallas as pl
from jax.experimental.pallas import tpu as pltpu


def _round_up(x, m):
    return ((x + m - 1) // m) * m


def _make_headwise_kernel(r, num_groups, group_dim, groups_per_chunk, blockdiag):
    """Fused kernel body for a static (uniform) rank configuration.

    refs:
      x_ref   : (tm, K)                 streamed input rows (pipelined)
      vtT_ref : (K, R)                  VT weight pre-transposed, resident
      w2_ref  : (G, r, gd) or (R, G*gd) U weights (stacked-T or block-diag), resident
      b_ref   : (1, G*gd) f32           concatenated U biases, resident
      o_ref   : (tm, G*gd)              output rows in final concatenated layout
    """

    def kernel(x_ref, vtT_ref, w2_ref, b_ref, o_ref):
        x = x_ref[...]
        for c0 in range(0, num_groups, groups_per_chunk):   # static, small
            c1 = min(c0 + groups_per_chunk, num_groups)
            # Stage 1 for this chunk of groups: (tm, K) @ (K, chunk_R).
            lat = jnp.dot(x, vtT_ref[:, c0 * r:c1 * r],
                          preferred_element_type=jnp.float32)
            # Keep latent in the input dtype (bf16 in production): full-rate
            # MXU for stage 2 and half the live intermediate.
            lat = lat.astype(x.dtype)

            if blockdiag:
                # One wide stage-2 matmul per chunk against the chunk's
                # block-diagonal weight, then a single lane-dense store.
                og = jnp.dot(
                    lat,
                    w2_ref[c0 * r:c1 * r, c0 * group_dim:c1 * group_dim],
                    preferred_element_type=jnp.float32)
                og = og + b_ref[:, c0 * group_dim:c1 * group_dim]
                o_ref[:, c0 * group_dim:c1 * group_dim] = og.astype(o_ref.dtype)
            else:
                # Per-group stage-2 dot + direct store into the output slice
                # (no concatenate; stores overlap the next group's MXU work).
                for g in range(c0, c1):
                    lo = (g - c0) * r
                    og = jnp.dot(lat[:, lo:lo + r], w2_ref[g],
                                 preferred_element_type=jnp.float32)
                    og = og + b_ref[:, g * group_dim:(g + 1) * group_dim]
                    o_ref[:, g * group_dim:(g + 1) * group_dim] = (
                        og.astype(o_ref.dtype))

    return kernel


def headwise_lowrank_forward(hidden_states, vt_weight, u_weight, u_bias, ranks,
                             *, tm_max=512, stage2_blockdiag=None):
    """Pallas implementation of HeadwiseLowRankModule.forward.

    hidden_states: (B, S, in_features)
    vt_weight    : (sum(ranks), in_features)     -- nn.Linear weight layout
    u_weight     : (num_groups, group_dim, r)    -- stacked per-group Linear weights
    u_bias       : (num_groups, group_dim)
    ranks        : list[int] (uniform, as in the Palu stacked-U path)
    returns      : (B, S, num_groups * group_dim)  == torch.cat(outputs, dim=-1)
    """
    B, S, K = hidden_states.shape
    G = len(ranks)
    gd = int(u_weight.shape[1])
    r = int(ranks[0])
    R = int(sum(ranks))
    # The stacked U-weight tensor implies uniform ranks (Palu config path).
    assert all(int(x) == r for x in ranks), \
        "fused kernel with stacked U weights assumes uniform ranks"
    # TODO(synk): non-uniform ranks would need a scalar-prefetch offset table.
    out_features = G * gd
    M = B * S
    dtype = hidden_states.dtype
    itemsize = jnp.dtype(dtype).itemsize
    w_itemsize = jnp.dtype(vt_weight.dtype).itemsize

    x_flat = hidden_states.reshape(M, K)

    # Pre-transpose static weights once (trace time): MXU-friendly layouts,
    # no per-step transposes inside the kernel.
    vtT = jnp.transpose(vt_weight)               # (K, R):     lat = x @ vtT
    uT = jnp.transpose(u_weight, (0, 2, 1))      # (G, r, gd): out_g = lat_g @ uT[g]
    bias_flat = u_bias.reshape(1, out_features).astype(jnp.float32)  # keep f32

    # Stage-2 strategy: block-diagonal single matmul when ranks are tiny and
    # group count is small (better MXU fill on the 256-deep v6e/v7x MXU).
    if stage2_blockdiag is None:
        stage2_blockdiag = (r < 128) and (G <= 8)
    if stage2_blockdiag:
        w2 = jnp.zeros((R, out_features), dtype=uT.dtype)
        for g in range(G):
            w2 = w2.at[g * r:(g + 1) * r, g * gd:(g + 1) * gd].set(uT[g])
        w2_elems = R * out_features
    else:
        w2 = uT
        w2_elems = R * gd

    # Chunk the rank axis so the live f32 latent stays ~<= (tm, 512).
    groups_per_chunk = max(1, min(G, 512 // max(r, 1)))
    chunk_R = groups_per_chunk * r
    chunk_out = groups_per_chunk * gd if stage2_blockdiag else gd

    # ---- VMEM budget & row-tile selection -------------------------------
    resident_bytes = (K * R * w_itemsize
                      + w2_elems * jnp.dtype(u_weight.dtype).itemsize
                      + out_features * 4)

    def _vmem_needed(tm):
        return (2 * tm * K * itemsize               # x, double-buffered
                + 2 * tm * out_features * itemsize  # out, double-buffered
                + tm * chunk_R * (4 + itemsize)     # f32 latent + cast copy
                + tm * chunk_out * 4                # stage-2 f32 result
                + resident_bytes)                   # weights (single copy)

    try:  # query the chip; fall back to the smallest (v7x per-TC) VMEM.
        vmem_cap = int(pltpu.get_tpu_info().vmem_capacity_bytes)
    except Exception:
        vmem_cap = 64 << 20
    budget = max(vmem_cap - (12 << 20), 16 << 20)   # headroom for Mosaic scratch
    tile_budget = min(budget, 48 << 20)             # conservative across chips

    sub = 8 if itemsize >= 4 else (16 if itemsize == 2 else 32)
    tm = _round_up(min(tm_max, _round_up(M, sub)), sub)
    while tm > sub and _vmem_needed(tm) > tile_budget:
        tm = max(sub, _round_up(tm // 2, sub))

    M_pad = _round_up(M, tm)
    # Give both v7x TensorCores a row tile when possible.
    if M_pad // tm < 2 and M > sub:
        tm = max(sub, _round_up((M + 1) // 2, sub))
        M_pad = _round_up(M, tm)

    if M_pad != M:
        x_flat = jnp.pad(x_flat, ((0, M_pad - M), (0, 0)))

    grid = (M_pad // tm,)

    flops = 2 * M_pad * K * R + 2 * M_pad * R * gd
    bytes_accessed = (M_pad * K * itemsize + M_pad * out_features * itemsize
                      + resident_bytes)
    cost = pl.CostEstimate(flops=flops, transcendentals=0,
                           bytes_accessed=bytes_accessed)

    vmem_limit = int(min(budget, max(_vmem_needed(tm) + (8 << 20), 32 << 20)))

    out_flat = pl.pallas_call(
        _make_headwise_kernel(r, G, gd, groups_per_chunk, stage2_blockdiag),
        out_shape=jax.ShapeDtypeStruct((M_pad, out_features), dtype),
        grid=grid,
        in_specs=[
            pl.BlockSpec((tm, K), lambda m: (m, 0)),                 # x rows (pipelined)
            pl.BlockSpec(memory_space=pltpu.MemorySpace.VMEM),       # VT^T resident, single copy
            pl.BlockSpec(memory_space=pltpu.MemorySpace.VMEM),       # U weights resident
            pl.BlockSpec(memory_space=pltpu.MemorySpace.VMEM),       # bias (f32) resident
        ],
        out_specs=pl.BlockSpec((tm, out_features), lambda m: (m, 0)),  # lane-dense final layout
        compiler_params=pltpu.CompilerParams(
            dimension_semantics=("parallel",),
            vmem_limit_bytes=vmem_limit),
        cost_estimate=cost,
    )(x_flat, vtT, w2, bias_flat)

    if M_pad != M:
        out_flat = out_flat[:M]
    return out_flat.reshape(B, S, out_features)


def reference_forward(hidden_states, vt_weight, u_weight, u_bias, ranks):
    """Plain-JAX reference matching the PyTorch module line by line."""
    lat = jnp.einsum("bsk,rk->bsr", hidden_states, vt_weight)   # self.VT(x)
    outs = []
    off = 0
    for i, r in enumerate(ranks):
        chunk = lat[:, :, off:off + r]
        outs.append(jnp.einsum("bsr,dr->bsd", chunk, u_weight[i]) + u_bias[i])
        off += r
    return jnp.concatenate(outs, axis=-1)


if __name__ == "__main__":
    # Small synthetic config consistent with the module's __init__.
    batch, seq = 2, 8
    in_features = 32
    num_groups = 4
    ranks = [8] * num_groups
    out_features = 32
    group_dim = out_features // num_groups           # 8
    bias = True

    key = jax.random.PRNGKey(0)
    k_x, k_vt, k_u, k_b, k_x2 = jax.random.split(key, 5)

    # Deterministic synthetic parameters (nn.Linear weight layout: (out, in)).
    x = jax.random.normal(k_x, (batch, seq, in_features), dtype=jnp.float32)
    vt_weight = jax.random.normal(k_vt, (sum(ranks), in_features),
                                  dtype=jnp.float32) * 0.05
    u_weight = jax.random.normal(k_u, (num_groups, group_dim, ranks[0]),
                                 dtype=jnp.float32)       # nn.init.normal_
    u_bias = (jax.random.normal(k_b, (num_groups, group_dim),
                                dtype=jnp.float32) * 0.01
              if bias else jnp.zeros((num_groups, group_dim), jnp.float32))

    fwd_auto = jax.jit(functools.partial(headwise_lowrank_forward, ranks=ranks))
    fwd_loop = jax.jit(functools.partial(headwise_lowrank_forward, ranks=ranks,
                                         stage2_blockdiag=False))
    fwd_bd = jax.jit(functools.partial(headwise_lowrank_forward, ranks=ranks,
                                       stage2_blockdiag=True))

    ref = reference_forward(x, vt_weight, u_weight, u_bias, ranks)
    for fwd in (fwd_auto, fwd_loop, fwd_bd):
        out = jax.block_until_ready(fwd(x, vt_weight, u_weight, u_bias))
        assert out.shape == (batch, seq, out_features)
        assert jnp.allclose(out, ref, atol=1e-4, rtol=1e-4), "mismatch vs reference"

    # Ragged case: B*S not a multiple of 8 -> exercises the padding path.
    seq2 = 13
    x2 = jax.random.normal(k_x2, (batch, seq2, in_features), dtype=jnp.float32)
    ref2 = reference_forward(x2, vt_weight, u_weight, u_bias, ranks)
    for fwd in (fwd_auto, fwd_loop, fwd_bd):
        out2 = jax.block_until_ready(fwd(x2, vt_weight, u_weight, u_bias))
        assert out2.shape == (batch, seq2, out_features)
        assert jnp.allclose(out2, ref2, atol=1e-4, rtol=1e-4), "ragged mismatch"

    print("KERNEL_OK")
</pallas_src>

<mosaic_0001>
module attributes {stable_mosaic.version = 11 : i64} {
  func.func @kernel(%arg0: i32, %arg1: memref<8x32xf32, #tpu.memory_space<vmem>>, %arg2: memref<32x32xf32, #tpu.memory_space<vmem>>, %arg3: memref<32x32xf32, #tpu.memory_space<vmem>>, %arg4: memref<1x32xf32, #tpu.memory_space<vmem>>, %arg5: memref<8x32xf32, #tpu.memory_space<vmem>>) attributes {dimension_semantics = [#tpu.dimension_semantics<parallel>], iteration_bounds = array<i64: 2>, scalar_prefetch = 0 : i64, scratch_operands = 0 : i64, tpu.core_type = #tpu.core_type<tc>, window_params = [{transform_indices = @transform_0, window_bounds = array<i64: 8, 32>}, {pipeline_mode = #tpu.pipeline_mode<synchronous>, transform_indices = @transform_1, window_bounds = array<i64: 32, 32>}, {pipeline_mode = #tpu.pipeline_mode<synchronous>, transform_indices = @transform_2, window_bounds = array<i64: 32, 32>}, {pipeline_mode = #tpu.pipeline_mode<synchronous>, transform_indices = @transform_3, window_bounds = array<i64: 1, 32>}, {transform_indices = @transform_4, window_bounds = array<i64: 8, 32>}]} {
    %c0 = arith.constant 0 : index
    %c0_0 = arith.constant 0 : index
    %0 = vector.load %arg1[%c0, %c0_0] : memref<8x32xf32, #tpu.memory_space<vmem>>, vector<8x32xf32>
    %c0_1 = arith.constant 0 : index
    %c0_2 = arith.constant 0 : index
    %1 = vector.load %arg2[%c0_1, %c0_2] : memref<32x32xf32, #tpu.memory_space<vmem>>, vector<32x32xf32>
    %cst = arith.constant dense<0.000000e+00> : vector<8x32xf32>
    %2 = tpu.matmul %0, %1, %cst {dimension_numbers = #tpu.dot_dimension_numbers<[1], [0], [0], [1], [0, 0, 1, 1], [], []>} : vector<8x32xf32>, vector<32x32xf32>, vector<8x32xf32> -> vector<8x32xf32>
    %c0_3 = arith.constant 0 : index
    %c0_4 = arith.constant 0 : index
    %3 = vector.load %arg3[%c0_3, %c0_4] : memref<32x32xf32, #tpu.memory_space<vmem>>, vector<32x32xf32>
    %cst_5 = arith.constant dense<0.000000e+00> : vector<8x32xf32>
    %4 = tpu.matmul %2, %3, %cst_5 {dimension_numbers = #tpu.dot_dimension_numbers<[1], [0], [0], [1], [0, 0, 1, 1], [], []>} : vector<8x32xf32>, vector<32x32xf32>, vector<8x32xf32> -> vector<8x32xf32>
    %c0_6 = arith.constant 0 : index
    %c0_7 = arith.constant 0 : index
    %5 = vector.load %arg4[%c0_6, %c0_7] : memref<1x32xf32, #tpu.memory_space<vmem>>, vector<1x32xf32>
    %6 = vector.broadcast %5 : vector<1x32xf32> to vector<8x32xf32>
    %7 = arith.addf %4, %6 : vector<8x32xf32>
    %c0_8 = arith.constant 0 : index
    %c0_9 = arith.constant 0 : index
    %8 = vector.load %arg5[%c0_8, %c0_9] : memref<8x32xf32, #tpu.memory_space<vmem>>, vector<8x32xf32>
    tpu.vector_store %arg5[%c0_8, %c0_9], %7 {strides = array<i32>} : memref<8x32xf32, #tpu.memory_space<vmem>>, vector<8x32xf32>,
    return
  }
  func.func @transform_0(%arg0: i32) -> (i32, i32) {
    %c0_i32 = arith.constant 0 : i32
    %c0_i32_0 = arith.constant 0 : i32
    return %arg0, %c0_i32 : i32, i32
  }
  func.func @transform_1(%arg0: i32) -> (i32, i32) {
    %c0_i32 = arith.constant 0 : i32
    %c0_i32_0 = arith.constant 0 : i32
    %c0_i32_1 = arith.constant 0 : i32
    return %c0_i32, %c0_i32_0 : i32, i32
  }
  func.func @transform_2(%arg0: i32) -> (i32, i32) {
    %c0_i32 = arith.constant 0 : i32
    %c0_i32_0 = arith.constant 0 : i32
    %c0_i32_1 = arith.constant 0 : i32
    return %c0_i32, %c0_i32_0 : i32, i32
  }
  func.func @transform_3(%arg0: i32) -> (i32, i32) {
    %c0_i32 = arith.constant 0 : i32
    %c0_i32_0 = arith.constant 0 : i32
    %c0_i32_1 = arith.constant 0 : i32
    return %c0_i32, %c0_i32_0 : i32, i32
  }
  func.func @transform_4(%arg0: i32) -> (i32, i32) {
    %c0_i32 = arith.constant 0 : i32
    %c0_i32_0 = arith.constant 0 : i32
    return %arg0, %c0_i32 : i32, i32
  }
}

</mosaic_0001>

<bundles_post_ra>
// kernel: headwise_lowrank_forward.1
= control target key start
LH: loop header
LB: loop body
LE: loop exit
PB: predicated region body
PF: predicated region fallthrough
CT: control target
= control target key end

     0   :  { %9 = vsyncpa [#allocation3], 0  ;;  %s731_s0 = inlined_call_operand.vmem [shape: f32[16,32], index: 0, kind: input, shape index: {}]   ;;  %s732_s1 = inlined_call_operand.vmem [shape: f32[32,32], index: 1, kind: input, shape index: {}]   ;;  %s733_s2 = inlined_call_operand.vmem [shape: f32[32,32], index: 2, kind: input, shape index: {}]   ;;  %s734_s3 = inlined_call_operand.vmem [shape: f32[1,32], index: 3, kind: input, shape index: {}]   ;;  %s735_s4 = inlined_call_operand.hbm [shape: f32[16,32], index: 4, kind: output, shape index: {}]  }
   0x1   :  { %11 = vsyncpa [#allocation3 + $0x1], 0  ;;  %s606_s15 = smov 0   ;;  %s608_s16 = smov 0  }
   0x2   :  { %s610_s17 = smov 0   ;;  %s612_s18 = smov 0  }
   0x3 LB: > { %s627_s19 = sadd.s32 4294967295, %s576_s18   ;;  %s430_s20 = sadd.s32 4294967294, %s576_s18   ;;  %s576_s18 = sphi %s612_s18, %s741_s18   ;;  %s572_s17 = sphi %s610_s17, %s740_s17   ;;  %s568_s16 = sphi %s608_s16, %s739_s16   ;;  %s564_s15 = sphi %s606_s15, %s738_s15  }
   0x4   : > { %s631_s21 = sadd.s32 1, %s576_s18   ;;  %s113_s22 = sadd.s32 1, %s572_s17 }
   0x5   : > { %s110_s23 = ssub.s32 %s576_s18, %s631_s21  ;;  %p123_p0 = scmp.ne.s32.totalorder %s572_s17, %s568_s16 }
   0x6   : > { %p111_p1 = scmp.eq.s32.totalorder %s110_s23, 0  ;;  %p124_p2 = scmp.eq.s32.totalorder %s627_s19, 1 }
   0x7   : > { %p129_p3 = scmp.ne.s32.totalorder %s568_s16, %s564_s15  ;;  %p130_p4 = scmp.eq.s32.totalorder %s430_s20, 1 }
   0x8   : > { %s642_s24 = scalar_select %p111_p1, %s572_s17, %s113_s22  }
   0x9   : > { %p644_p5 = por %p124_p2, %p123_p0  ;;  %p648_p6 = por %p130_p4, %p129_p3 }
   0xa   : > { %p433_p7 = scmp.ge.s32.totalorder %s576_s18, 1  ;;  %p164_p8 = scmp.lt.s32.totalorder %s576_s18, 3 }
   0xc   : > { %p165_p9 = pnand %p433_p7, %p164_p8 }
   0xd   : > { %p189_p10 = scmp.lt.s32.totalorder (!%p165_p9), %s627_s19, 1  ;;  %s186_s5 = sand.u32 (!%p165_p9), 1, %s568_s16  }
   0xe   : > { %168 = sbr.rel (%p165_p9) target bundleno = 429 (0x1ad), region = 36  ;;  %s434_s6 = sshll.u32 (!%p165_p9), %s186_s5, 3 }
   0xf   : > { %s440_s9 = sshll.u32 (!%p165_p9), %s627_s19, 7  ;;  %s188_s10 = scalar_lea.vmem (!%p165_p9), [#allocation2], %s434_s6 }
  0x10   : > { %s371_s11 = sshll.u32 (!%p165_p9), %s188_s10, 4  ;;  %s695_s14 = scalar_lea.hbm (!%p165_p9), %s735_s4, %s440_s9  ;;  %s372_s11 = int_to_ptr.vmem [resolvable:$true] %s371_s11 }
  0x11   : > { %s358_s20 = scalar_lea.sflag (!%p165_p9), [#allocation3], %s186_s5  ;;  %s516_s22 = scalar_lea.vmem (!%p165_p9), %s372_s11, 128 }
  0x12   : > { %p517_p11 = scmp.ne.s32.totalorder (!%p165_p9), %s372_s11, %s516_s22 }
  0x13   : > { %v197_v0 = vld [vmem:[%s732_s1 + $0x18] sm:$0xff]  ;;  %v578_v1 = vmov 0.0   ;;  %v196_v2 = vld [vmem:[%s732_s1 + $0x10] sm:$0xff]  ;;  %vm579_vm0 = vmmov 0   ;;  %s190_s7 = scalar_select %p189_p10, %s627_s19, 1  ;;  %v195_v5 = vld [vmem:[%s732_s1 + $0x8] sm:$0xff] }
  0x14   : > { %453 = vmatprep.subr.mxu0 %v578_v1  ;;  %461 = vmatprep.mubr.msk.f32.mxu0 %vm579_vm0, %v578_v1  ;;  %v275_v3 = vld [vmem:[%s733_s2 + $0x18] sm:$0xff]  ;;  %v274_v4 = vld [vmem:[%s733_s2 + $0x10] sm:$0xff]  ;;  %v273_v6 = vld [vmem:[%s733_s2 + $0x8] sm:$0xff]  ;;  %vm198_vm1 = vcmask 261120   ;;  %p518_p12 = pnand %p517_p11, %p644_p5  ;;  %s580_s19 = smov [#allocation2]  }
  0x15   : > { %454 = vmatpush3.msra.mxu0 %v197_v0  ;;  %464 = vmatprep.subr.mxu1 %v578_v1  ;;  %s435_s12 = sshll.u32 %s190_s7, 3  ;;  %v194_v7 = vld [vmem:[%s732_s1] sm:$0xff]  ;;  %s520_s23 = sshll.u32 %s580_s19, 4  ;;  %s521_s23 = int_to_ptr.vmem [resolvable:$false] %s520_s23 }
  0x16   : > { %455 = vmatprep.subr.mxu0 %v578_v1  ;;  %465 = vmatpush3.msra.mxu1 %v275_v3  ;;  %s192_s28 = scalar_lea.vmem %s731_s0, %s435_s12  ;;  %v272_v9 = vld [vmem:[%s733_s2] sm:$0xff]  ;;  %p519_p13 = pneg %p518_p12 }
  0x17   : > { %456 = vmatpush3.msra.mxu0 %v196_v2  ;;  %466 = vmatprep.subr.mxu1 %v578_v1  ;;  %v193_v8 = vld [vmem:[%s192_s28] sm:$0xff]  ;;  %s522_s27 = scalar_lea.vmem %s521_s23, 256  ;;  %p523_p0 = scmp.lt.s32.totalorder %s372_s11, %s521_s23 }
  0x18   : > { %457 = vmatprep.subr.mxu0 %v578_v1  ;;  %467 = vmatpush3.msra.mxu1 %v274_v4  ;;  %v437_v12 = vld [vmem:[%s734_s3] ss:$0 sm:$0xff]  ;;  %p524_p1 = scmp.lt.s32.totalorder %s522_s27, %s516_s22 }
  0x19   : > { %458 = vmatpush3.msra.mxu0 %v195_v5  ;;  %468 = vmatprep.subr.mxu1 %v578_v1 }
  0x1a   : > { %459 = vmatprep.subr.mxu0 %v578_v1  ;;  %469 = vmatpush3.msra.mxu1 %v273_v6  ;;  %p525_p2 = por %p524_p1, %p523_p0 }
  0x1b   : > { %460 = vmatpush3.msra.mxu0 %v194_v7  ;;  %470 = vmatprep.subr.mxu1 %v578_v1 }
  0x1c   : > { %462 = vmatmul.mubr.msk.f32.vlgmr.msra.gmra.mxu0 %vm198_vm1, %v193_v8  ;;  %472 = vmatprep.mubr.msk.f32.mxu1 %vm579_vm0, %v578_v1  ;;  %p526_p3 = pnand %p525_p2, %p519_p13 }
  0x1d   : > { %471 = vmatpush3.msra.mxu1 %v272_v9 }
  0xdc   : > { %v268_v10 = vpop.f32.mrf.mxu0 }
  0xdd   : > { %473 = vmatmul.mubr.msk.f32.vlgmr.msra.gmra.mxu1 %vm198_vm1, %v268_v10 }
  0xde   : > { %v463_v11 = vpop.f32.mrf.mxu0 }
 0x19d   : > { %v352_v13 = vpop.f32.mrf.mxu1 }
 0x19e   : > { %v353_v14 = vadd.f32 %v437_v12, %v352_v13 }
 0x19f   : > { %v474_v15 = vpop.f32.mrf.mxu1 }
 0x1a0   : > { %356 = vst.msk [vmem:[%s188_s10] sm:$0xff] %vm198_vm1, %v353_v14 }
 0x1a1   : > { %529 = shalt.err (!%p526_p3)
}
 0x1a2   : > { %s530_s28 = scalar_lea.hbm %s695_s14, 128  ;;  %s534_s5 = scalar_lea.hbm %s735_s4, 256 }
 0x1a3   : > { %p531_p4 = scmp.ne.s32.totalorder %s695_s14, %s530_s28  ;;  %p535_p9 = scmp.lt.s32.totalorder %s695_s14, %s735_s4 }
 0x1a4   : > { %p536_p10 = scmp.lt.s32.totalorder %s534_s5, %s530_s28 }
 0x1a5   : > { %p532_p7 = pnand %p531_p4, %p644_p5 }
 0x1a6   : > { %p537_p11 = por %p536_p10, %p535_p9 }
 0x1a7   : > { %p533_p8 = pneg %p532_p7 }
 0x1a9   : > { %p538_p12 = pnand %p537_p11, %p533_p8 }
 0x1ab   : > { %541 = shalt.err (!%p538_p12)
}
 0x1ac   : > { %475 = dma.vmem_to_hbm [thread:$0]  (%p644_p5), %s372_s11, 128, %s695_s14, %s358_s20  }
 0x1ad PF: > { %p481_p13 = scmp.ge.s32.totalorder %s576_s18, 2  ;;  %s383_s8 = sand.u32 1, %s564_s15  }
 0x1ae   : > { %s384_s9 = scalar_lea.sflag [#allocation3], %s383_s8 }
 0x1af   : > { %p478_p0 = pnand %p481_p13, %p648_p6 }
 0x1b1   : > { %p479_p1 = pneg %p478_p0 }
 0x1b3   : > { %559 = dma.done.wait (%p479_p1), %s384_s9, 128  }
 0x1b4   : > { %561 = vsyncadd (%p479_p1), %s384_s9, 4294967168  ;;  %p14_p2 = scmp.ge.s32.totalorder %s631_s21, 4   ;;  %s738_s15 = smov %s568_s16 }
 0x1b5   : > { %s739_s16 = smov %s572_s17  ;;  %s740_s17 = smov %s642_s24 }
 0x1b6   : > { %s741_s18 = smov %s631_s21  ;;  %16 = sbr.rel (!%p14_p2) target bundleno = 3 (0x3), region = 71 }
 0x1bb   :  { %389 = vsyncpa [#allocation3], 1 }
 0x1bc   :  { %391 = vsyncpa [#allocation3 + $0x1], 1 }

</bundles_post_ra>
